<compile_context>
chip_gen: v7x
topology: tpu7x:2x2x1
jax: 0.10.0
libtpu: 0.0.40
codegen_flags: <defaults>
</compile_context>

<pallas_src>
import functools
import math

import jax
import jax.numpy as jnp
from jax.experimental import pallas as pl
from jax.experimental.pallas import tpu as pltpu


def _dgc_kernel(adj_ref, x_ref, w1_ref, w2_ref, o_ref, *,
                mm_dtype, approx_recip, lane_dense):
    bt, n, _ = adj_ref.shape          # (Bt, N, N)
    fin = x_ref.shape[-1]
    fout = w1_ref.shape[-1]

    adj = adj_ref[...]                # (Bt, N, N)
    x = x_ref[...]                    # (Bt, N, Fin)   already in mm_dtype
    w1 = w1_ref[...]                  # (Fin, Fout)    already in mm_dtype
    w2 = w2_ref[...]                  # (Fin, Fout)

    # ---- normalization factors (f32 accumulation, reciprocal on the EUP) ----
    # forward: normalize_adj(adj) @ y == diag(1/rowsum) @ (adj @ y), so scale AFTER
    # the propagation matmul (O(N*Fout) multiplies instead of O(N^2) divides).
    rowsum = jnp.sum(adj, axis=2, keepdims=True, dtype=jnp.float32)   # (Bt, N, 1)
    inv_row = pl.reciprocal(rowsum, approx=approx_recip)
    # reverse: the 1/colsum factor is also applied after the transposed contraction
    # (no N^2 adj_cn temporary); only this tiny (Bt, N) vector is relayouted.
    colsum = jnp.sum(adj, axis=1, keepdims=True, dtype=jnp.float32)   # (Bt, 1, N)
    inv_col = pl.reciprocal(colsum, approx=approx_recip).reshape(bt, n, 1)
    # NOTE: like the torch module, assumes no all-zero rows/columns in adj.

    # ---- feature matmuls: one shared x tile, two small (Fin,Fout) MXU pushes ----
    # (no fused [W1|W2] -> no lane-crossing slice of the product when Fout % 128 != 0)
    xf = x.reshape(bt * n, fin)
    xw1 = jnp.dot(xf, w1, preferred_element_type=jnp.float32).reshape(bt, n, fout)
    xw2 = jnp.dot(xf, w2, preferred_element_type=jnp.float32).reshape(bt, n, fout)

    # ---- graph propagation: single mm_dtype copy of adj reused by both einsums ----
    adj_mm = adj.astype(mm_dtype)
    p1 = jnp.einsum('bij,bjf->bif', adj_mm, xw1.astype(mm_dtype),
                    preferred_element_type=jnp.float32)               # (Bt, N, Fout)
    out1 = jnp.maximum(p1 * inv_row, 0.0)

    # reverse path: adj^T @ xw2 as a transposed contraction over adj's row axis
    # (MXU-native, no XLU transpose of adj), then row-scale by 1/colsum.
    p2 = jnp.einsum('bji,bjf->bif', adj_mm, xw2.astype(mm_dtype),
                    preferred_element_type=jnp.float32)               # (Bt, N, Fout)
    out2 = jnp.maximum(p2 * inv_col, 0.0)

    out = (out1 + out2) * 0.5          # Dropout(p=0.1) is identity in eval mode.

    if lane_dense:
        # Lane-dense store: last dim is a multiple of 128 -> unmasked vst + dense DMA.
        o_ref[...] = out.reshape(bt, 1, n * fout).astype(o_ref.dtype)
    else:
        o_ref[...] = out.astype(o_ref.dtype)


def _vmem_capacity_bytes():
    try:
        return int(pltpu.get_tpu_info().vmem_capacity_bytes)
    except Exception:
        return 64 * 1024 * 1024   # conservative fallback (v7x-sized VMEM)


def _per_graph_vmem_bytes(n, fin, fout, adj_bytes, x_bytes, out_bytes, mm_bytes):
    """Honest per-graph footprint: double-buffered I/O blocks + in-body temporaries."""
    io = 2 * (n * n * adj_bytes + n * fin * x_bytes + n * fout * out_bytes)
    body = (n * n * mm_bytes            # adj cast for the MXU
            + 2 * n * fout * 4          # xw1, xw2 (f32)
            + 2 * n * fout * mm_bytes   # mm-dtype copies fed to the propagation matmuls
            + 4 * n * fout * 4)         # p1 / p2 / out1 / out2 live set
    return io + body


def _pick_block_b(batch, per_graph_bytes, budget_bytes):
    # Keep >= 2 grid steps when possible so both v7x TensorCores get work.
    bt = max(1, batch // 2) if batch >= 2 else 1
    bt = max(1, min(bt, budget_bytes // max(per_graph_bytes, 1)))
    while batch % bt:
        bt -= 1
    return max(bt, 1)


def directed_graph_convolution(inputs, adj, weight1, weight2, *,
                               matmul_dtype=jnp.bfloat16,
                               cast_adj_to_matmul_dtype=False,
                               block_b=None):
    """Pallas implementation of DirectedGraphConvolution.forward (eval mode)."""
    B, N, Fin = inputs.shape
    Fout = weight1.shape[1]
    assert adj.shape == (B, N, N)
    assert weight1.shape == (Fin, Fout) and weight2.shape == (Fin, Fout)

    mm_bytes = jnp.dtype(matmul_dtype).itemsize
    out_dtype = inputs.dtype
    out_bytes = jnp.dtype(out_dtype).itemsize

    # DMA x and the weights in the matmul dtype (halves their HBM bytes for bf16).
    x_in = inputs.astype(matmul_dtype)
    w1_in = weight1.astype(matmul_dtype)
    w2_in = weight2.astype(matmul_dtype)
    # adj dominates HBM traffic; optionally ship it in the matmul dtype too
    # (normalization sums still accumulate in f32, ~0.4% extra error).
    adj_in = adj.astype(matmul_dtype) if cast_adj_to_matmul_dtype else adj
    adj_bytes = jnp.dtype(adj_in.dtype).itemsize

    vmem_cap = _vmem_capacity_bytes()
    per_graph = _per_graph_vmem_bytes(N, Fin, Fout, adj_bytes, mm_bytes,
                                      out_bytes, mm_bytes)
    if block_b is None:
        block_b = _pick_block_b(B, per_graph, budget_bytes=vmem_cap // 10)
    assert B % block_b == 0

    weights_bytes = 2 * 2 * Fin * Fout * mm_bytes            # double-buffered W1, W2
    step_bytes = block_b * per_graph + weights_bytes
    vmem_limit = int(min(0.8 * vmem_cap, max(32 * 1024 * 1024, 4 * step_bytes)))

    lane_dense = (Fout % 128 != 0) and ((N * Fout) % 128 == 0)
    if lane_dense:
        out_shape = jax.ShapeDtypeStruct((B, 1, N * Fout), out_dtype)
        out_spec = pl.BlockSpec((block_b, 1, N * Fout), lambda b: (b, 0, 0))
    else:
        out_shape = jax.ShapeDtypeStruct((B, N, Fout), out_dtype)
        out_spec = pl.BlockSpec((block_b, N, Fout), lambda b: (b, 0, 0))

    kernel = functools.partial(
        _dgc_kernel,
        mm_dtype=matmul_dtype,
        approx_recip=(matmul_dtype != jnp.float32),   # exact reciprocal on f32 path
        lane_dense=lane_dense)

    result = pl.pallas_call(
        kernel,
        out_shape=out_shape,
        grid_spec=pltpu.PrefetchScalarGridSpec(
            num_scalar_prefetch=0,
            grid=(B // block_b,),
            in_specs=[
                pl.BlockSpec((block_b, N, N), lambda b: (b, 0, 0)),     # adj
                pl.BlockSpec((block_b, N, Fin), lambda b: (b, 0, 0)),   # x
                pl.BlockSpec((Fin, Fout), lambda b: (0, 0)),            # W1
                pl.BlockSpec((Fin, Fout), lambda b: (0, 0)),            # W2
            ],
            out_specs=out_spec,
        ),
        compiler_params=pltpu.CompilerParams(
            dimension_semantics=("parallel",),
            vmem_limit_bytes=vmem_limit),
    )(adj_in, x_in, w1_in, w2_in)

    return result.reshape(B, N, Fout)


def xavier_uniform(key, shape, dtype=jnp.float32):
    fan_in, fan_out = shape
    limit = math.sqrt(6.0 / (fan_in + fan_out))
    return jax.random.uniform(key, shape, dtype, minval=-limit, maxval=limit)


def reference_forward(inputs, adj, w1, w2):
    """Pure-JAX reference mirroring the torch forward (eval mode)."""
    rowsum = jnp.sum(adj, axis=2, keepdims=True)
    norm_adj = adj / rowsum
    out1 = jax.nn.relu(jnp.matmul(norm_adj, jnp.matmul(inputs, w1)))
    adj_t = jnp.swapaxes(adj, 1, 2)
    rowsum_t = jnp.sum(adj_t, axis=2, keepdims=True)
    inv_norm_adj = adj_t / rowsum_t
    out2 = jax.nn.relu(jnp.matmul(inv_norm_adj, jnp.matmul(inputs, w2)))
    return (out1 + out2) / 2.0


if __name__ == "__main__":
    key = jax.random.PRNGKey(0)
    k_adj, k_x, k_w1, k_w2 = jax.random.split(key, 4)

    B, N, Fin, Fout = 2, 8, 16, 32

    # adjacency: positive entries so row/column sums are nonzero (module assumption)
    adj = jax.random.uniform(k_adj, (B, N, N), jnp.float32, minval=0.1, maxval=1.0)
    inputs = jax.random.normal(k_x, (B, N, Fin), jnp.float32)

    weight1 = xavier_uniform(k_w1, (Fin, Fout))
    weight2 = xavier_uniform(k_w2, (Fin, Fout))

    ref = reference_forward(inputs, adj, weight1, weight2)

    # Default path: bf16 matmul operands, f32 accumulation (deliberate precision trade).
    out_bf16 = jax.block_until_ready(
        directed_graph_convolution(inputs, adj, weight1, weight2))
    assert out_bf16.shape == (B, N, Fout)
    assert jnp.allclose(out_bf16, ref, atol=5e-2, rtol=5e-2), "bf16 path mismatch"

    # Full f32 path (exact reciprocals; should track the reference closely).
    out_f32 = jax.block_until_ready(
        directed_graph_convolution(inputs, adj, weight1, weight2,
                                   matmul_dtype=jnp.float32))
    assert out_f32.shape == (B, N, Fout)
    assert jnp.allclose(out_f32, ref, atol=5e-3, rtol=5e-3), "f32 path mismatch"

    print("KERNEL_OK")
</pallas_src>

<mosaic_0001>
module attributes {stable_mosaic.version = 11 : i64} {
  func.func @_dgc_kernel(%arg0: i32, %arg1: memref<1x8x8xf32, #tpu.memory_space<vmem>>, %arg2: memref<1x8x16xbf16, #tpu.memory_space<vmem>>, %arg3: memref<16x32xbf16, #tpu.memory_space<vmem>>, %arg4: memref<16x32xbf16, #tpu.memory_space<vmem>>, %arg5: memref<1x1x256xf32, #tpu.memory_space<vmem>>) attributes {dimension_semantics = [#tpu.dimension_semantics<parallel>], iteration_bounds = array<i64: 2>, scalar_prefetch = 0 : i64, scratch_operands = 0 : i64, tpu.core_type = #tpu.core_type<tc>, window_params = [{transform_indices = @transform_0, window_bounds = array<i64: 1, 8, 8>}, {transform_indices = @transform_1, window_bounds = array<i64: 1, 8, 16>}, {pipeline_mode = #tpu.pipeline_mode<synchronous>, transform_indices = @transform_2, window_bounds = array<i64: 16, 32>}, {pipeline_mode = #tpu.pipeline_mode<synchronous>, transform_indices = @transform_3, window_bounds = array<i64: 16, 32>}, {transform_indices = @transform_4, window_bounds = array<i64: 1, 1, 256>}]} {
    %c0 = arith.constant 0 : index
    %c0_0 = arith.constant 0 : index
    %c0_1 = arith.constant 0 : index
    %0 = vector.load %arg1[%c0, %c0_0, %c0_1] : memref<1x8x8xf32, #tpu.memory_space<vmem>>, vector<1x8x8xf32>
    %c0_2 = arith.constant 0 : index
    %c0_3 = arith.constant 0 : index
    %c0_4 = arith.constant 0 : index
    %1 = vector.load %arg2[%c0_2, %c0_3, %c0_4] : memref<1x8x16xbf16, #tpu.memory_space<vmem>>, vector<1x8x16xbf16>
    %c0_5 = arith.constant 0 : index
    %c0_6 = arith.constant 0 : index
    %2 = vector.load %arg3[%c0_5, %c0_6] : memref<16x32xbf16, #tpu.memory_space<vmem>>, vector<16x32xbf16>
    %c0_7 = arith.constant 0 : index
    %c0_8 = arith.constant 0 : index
    %3 = vector.load %arg4[%c0_7, %c0_8] : memref<16x32xbf16, #tpu.memory_space<vmem>>, vector<16x32xbf16>
    %cst = arith.constant dense<0.000000e+00> : vector<1x8xf32>
    %4 = vector.multi_reduction <add>, %0, %cst [2] : vector<1x8x8xf32> to vector<1x8xf32>
    %5 = vector.shape_cast %4 : vector<1x8xf32> to vector<1x8x1xf32>
    %6 = tpu.reciprocal %5 {approx = true} : vector<1x8x1xf32> -> vector<1x8x1xf32>
    %cst_9 = arith.constant dense<0.000000e+00> : vector<1x8xf32>
    %7 = vector.multi_reduction <add>, %0, %cst_9 [1] : vector<1x8x8xf32> to vector<1x8xf32>
    %8 = vector.shape_cast %7 : vector<1x8xf32> to vector<1x1x8xf32>
    %9 = tpu.reciprocal %8 {approx = true} : vector<1x1x8xf32> -> vector<1x1x8xf32>
    %10 = vector.shape_cast %9 : vector<1x1x8xf32> to vector<1x8x1xf32>
    %11 = vector.shape_cast %1 : vector<1x8x16xbf16> to vector<8x16xbf16>
    %cst_10 = arith.constant dense<0.000000e+00> : vector<8x32xf32>
    %12 = tpu.matmul %11, %2, %cst_10 {dimension_numbers = #tpu.dot_dimension_numbers<[1], [0], [0], [1], [0, 0, 1, 1], [], []>} : vector<8x16xbf16>, vector<16x32xbf16>, vector<8x32xf32> -> vector<8x32xf32>
    %13 = vector.shape_cast %12 : vector<8x32xf32> to vector<1x8x32xf32>
    %cst_11 = arith.constant dense<0.000000e+00> : vector<8x32xf32>
    %14 = tpu.matmul %11, %3, %cst_11 {dimension_numbers = #tpu.dot_dimension_numbers<[1], [0], [0], [1], [0, 0, 1, 1], [], []>} : vector<8x16xbf16>, vector<16x32xbf16>, vector<8x32xf32> -> vector<8x32xf32>
    %15 = vector.shape_cast %14 : vector<8x32xf32> to vector<1x8x32xf32>
    %16 = arith.truncf %0 : vector<1x8x8xf32> to vector<1x8x8xbf16>
    %17 = arith.truncf %13 : vector<1x8x32xf32> to vector<1x8x32xbf16>
    "tpu.trace_start"() <{level = 10 : i32, message = "bij,bjf->bif"}> : () -> ()
    %cst_12 = arith.constant dense<0.000000e+00> : vector<1x8x32xf32>
    %18 = tpu.matmul %16, %17, %cst_12 {dimension_numbers = #tpu.dot_dimension_numbers<[2], [1], [1], [2], [0, 0, 0, 1, 1, 2], [0], [0]>} : vector<1x8x8xbf16>, vector<1x8x32xbf16>, vector<1x8x32xf32> -> vector<1x8x32xf32>
    "tpu.trace_stop"() : () -> ()
    %19 = vector.broadcast %6 : vector<1x8x1xf32> to vector<1x8x32xf32>
    %20 = arith.mulf %18, %19 : vector<1x8x32xf32>
    %cst_13 = arith.constant 0.000000e+00 : f32
    %21 = vector.broadcast %cst_13 : f32 to vector<1x8x32xf32>
    %22 = arith.maximumf %20, %21 : vector<1x8x32xf32>
    %23 = arith.truncf %15 : vector<1x8x32xf32> to vector<1x8x32xbf16>
    "tpu.trace_start"() <{level = 10 : i32, message = "bji,bjf->bif"}> : () -> ()
    %cst_14 = arith.constant dense<0.000000e+00> : vector<1x8x32xf32>
    %24 = tpu.matmul %16, %23, %cst_14 {dimension_numbers = #tpu.dot_dimension_numbers<[1], [1], [2], [2], [0, 0, 0, 2, 1, 2], [0], [0]>} : vector<1x8x8xbf16>, vector<1x8x32xbf16>, vector<1x8x32xf32> -> vector<1x8x32xf32>
    "tpu.trace_stop"() : () -> ()
    %25 = vector.broadcast %10 : vector<1x8x1xf32> to vector<1x8x32xf32>
    %26 = arith.mulf %24, %25 : vector<1x8x32xf32>
    %cst_15 = arith.constant 0.000000e+00 : f32
    %27 = vector.broadcast %cst_15 : f32 to vector<1x8x32xf32>
    %28 = arith.maximumf %26, %27 : vector<1x8x32xf32>
    %29 = arith.addf %22, %28 : vector<1x8x32xf32>
    %cst_16 = arith.constant 5.000000e-01 : f32
    %30 = vector.broadcast %cst_16 : f32 to vector<1x8x32xf32>
    %31 = arith.mulf %29, %30 : vector<1x8x32xf32>
    %32 = vector.shape_cast %31 : vector<1x8x32xf32> to vector<1x1x256xf32>
    %c0_17 = arith.constant 0 : index
    %c0_18 = arith.constant 0 : index
    %c0_19 = arith.constant 0 : index
    %33 = vector.load %arg5[%c0_17, %c0_18, %c0_19] : memref<1x1x256xf32, #tpu.memory_space<vmem>>, vector<1x1x256xf32>
    tpu.vector_store %arg5[%c0_17, %c0_18, %c0_19], %32 {strides = array<i32>} : memref<1x1x256xf32, #tpu.memory_space<vmem>>, vector<1x1x256xf32>,
    return
  }
  func.func @transform_0(%arg0: i32) -> (i32, i32, i32) {
    %c0_i32 = arith.constant 0 : i32
    %c0_i32_0 = arith.constant 0 : i32
    %c0_i32_1 = arith.constant 0 : i32
    return %arg0, %c0_i32, %c0_i32_0 : i32, i32, i32
  }
  func.func @transform_1(%arg0: i32) -> (i32, i32, i32) {
    %c0_i32 = arith.constant 0 : i32
    %c0_i32_0 = arith.constant 0 : i32
    %c0_i32_1 = arith.constant 0 : i32
    return %arg0, %c0_i32, %c0_i32_0 : i32, i32, i32
  }
  func.func @transform_2(%arg0: i32) -> (i32, i32) {
    %c0_i32 = arith.constant 0 : i32
    %c0_i32_0 = arith.constant 0 : i32
    %c0_i32_1 = arith.constant 0 : i32
    return %c0_i32, %c0_i32_0 : i32, i32
  }
  func.func @transform_3(%arg0: i32) -> (i32, i32) {
    %c0_i32 = arith.constant 0 : i32
    %c0_i32_0 = arith.constant 0 : i32
    %c0_i32_1 = arith.constant 0 : i32
    return %c0_i32, %c0_i32_0 : i32, i32
  }
  func.func @transform_4(%arg0: i32) -> (i32, i32, i32) {
    %c0_i32 = arith.constant 0 : i32
    %c0_i32_0 = arith.constant 0 : i32
    %c0_i32_1 = arith.constant 0 : i32
    return %arg0, %c0_i32, %c0_i32_0 : i32, i32, i32
  }
}

</mosaic_0001>

<bundles_post_ra>
// kernel: tpu_custom_call.1
= control target key start
LH: loop header
LB: loop body
LE: loop exit
PB: predicated region body
PF: predicated region fallthrough
CT: control target
= control target key end

     0   :  { %9 = vsyncpa [#allocation3], 0  ;;  %s1324_s0 = inlined_call_operand.hbm [shape: f32[2,8,8], index: 0, kind: input, shape index: {}]   ;;  %s1325_s1 = inlined_call_operand.hbm [shape: bf16[2,8,16], index: 1, kind: input, shape index: {}]   ;;  %s1326_s2 = inlined_call_operand.hbm [shape: bf16[16,32], index: 2, kind: input, shape index: {}]   ;;  %s1327_s3 = inlined_call_operand.vmem [shape: bf16[16,32], index: 3, kind: input, shape index: {}]   ;;  %s1328_s4 = inlined_call_operand.hbm [shape: f32[2,1,256], index: 4, kind: output, shape index: {}]  }
   0x1   :  { %11 = vsyncpa [#allocation3 + $0x1], 0 }
   0x2   :  { %12 = vsyncpa [#allocation6], 0 }
   0x3   :  { %14 = vsyncpa [#allocation6 + $0x1], 0 }
   0x4   :  { %15 = vsyncpa [#allocation4], 0 }
   0x5   :  { %17 = vsyncpa [#allocation4 + $0x1], 0  ;;  %s1061_s15 = smov 0   ;;  %s1063_s16 = smov 0  }
   0x6   :  { %s1065_s17 = smov 0   ;;  %s1067_s18 = smov 0  }
   0x7 LB: > { %s1082_s19 = sadd.s32 4294967295, %s1020_s18   ;;  %s722_s20 = sadd.s32 4294967294, %s1020_s18   ;;  %s1020_s18 = sphi %s1067_s18, %s1350_s18   ;;  %s1016_s17 = sphi %s1065_s17, %s1349_s17   ;;  %s1012_s16 = sphi %s1063_s16, %s1348_s16   ;;  %s1008_s15 = sphi %s1061_s15, %s1347_s15  }
   0x8   : > { %p43_p0 = scmp.ne.s32.totalorder %s1012_s16, %s1008_s15  ;;  %p1329_p1 = scmp.eq.s32.totalorder %s1082_s19, 0 }
   0x9   : > { %p141_p3 = scmp.eq.s32.totalorder %s722_s20, 1  ;;  %p723_p5 = scmp.ge.s32.totalorder %s1020_s18, 1 }
   0xa   : > { %p1091_p4 = por %p1329_p1, %p43_p0  ;;  %p148_p7 = scmp.lt.s32.totalorder %s1020_s18, 3 }
   0xb   : > { %p1096_p6 = por %p141_p3, %p43_p0  ;;  %s1022_s24 = smov [#allocation7]  }
   0xc   : > { %s1333_s21 = scalar_select %p1091_p4, 1, 0 }
   0xd   : > { %s1334_s22 = scalar_select %p1096_p6, 1, 0 }
   0xe   : > { %p1101_p8 = pnand %p723_p5, %p148_p7  ;;  %s160_s25 = sshll.u32 %s1022_s24, 4  ;;  %s1105_s25 = int_to_ptr.vmem [resolvable:$true] %s160_s25 }
   0xf   : > { %s1117_s27 = sadd.s32 1, %s1020_s18   ;;  %s30_s28 = sadd.s32 1, %s1016_s17 }
  0x10   : > { %s1335_s23 = scalar_select %p1101_p8, 1, 0 }
  0x11   : > { %p789_p9 = pneg %p1101_p8  ;;  %s27_s29 = ssub.s32 %s1020_s18, %s1117_s27 }
  0x12   : > { %s858_s6 = scalar_lea.hbm %s1326_s2, 128 }
  0x13   : > { %p1112_p11 = pnand %p789_p9, %p1329_p1  ;;  %p859_p12 = scmp.ne.s32.totalorder %s1326_s2, %s858_s6 }
  0x14   : > { %p865_p5 = scmp.lt.u32.totalorder %s858_s6, %s1326_s2 }
  0x15   : > { %p860_p13 = pneg %p1112_p11 }
  0x17   : > { %p861_p0 = pnand %p860_p13, %p859_p12 }
  0x19   : > { %p862_p3 = pneg %p861_p0 }
  0x1b   : > { %p867_p7 = pnand %p865_p5, %p862_p3 }
  0x1d   : > { %870 = shalt.err (!%p867_p7)
}
  0x1e   : > { %s871_s11 = scalar_lea.vmem %s1105_s25, 128  ;;  %p879_p2 = scmp.lt.s32.totalorder %s1105_s25, %s1105_s25 }
  0x1f   : > { %p872_p9 = scmp.ne.s32.totalorder %s1105_s25, %s871_s11  ;;  %p880_p6 = scmp.lt.s32.totalorder %s871_s11, %s871_s11 }
  0x21   : > { %p874_p10 = pnand %p872_p9, %p860_p13  ;;  %p881_p4 = por %p880_p6, %p879_p2 }
  0x23   : > { %p875_p1 = pneg %p874_p10 }
  0x25   : > { %p882_p8 = pnand %p881_p4, %p875_p1 }
  0x27   : > { %885 = shalt.err (!%p882_p8)
}
  0x28   : > { %s1023_s12 = smov 64   ;;  %s1024_s13 = smov 4  }
  0x29   : > { %792 = dma.hbm_to_vmem [thread:$0]  (!%p1112_p11), %s1326_s2, 128, %s1105_s25, [#allocation6], %s1023_s12, %s1023_s12, %s1024_s13  }
  0x2a   : > { %p28_p1 = scmp.eq.s32.totalorder %s27_s29, 0  ;;  %p37_p2 = scmp.ne.s32.totalorder %s1016_s17, %s1012_s16 }
  0x2b   : > { %p38_p4 = scmp.eq.s32.totalorder %s1020_s18, 0  ;;  %p805_p6 = scmp.lt.s32.totalorder %s1020_s18, 2 }
  0x2c   : > { %s1148_s24 = scalar_select %p28_p1, %s1016_s17, %s30_s28  }
  0x2d   : > { %p39_p8 = por %p38_p4, %p37_p2  ;;  %p1337_p10 = scmp.eq.s32.totalorder %s1082_s19, 1 }
  0x2e   : > { %s1157_s5 = sand.u32 1, %s1016_s17   ;;  %s727_s26 = sshll.u32 %s1020_s18, 7 }
  0x2f   : > { %p1152_p12 = por %p1337_p10, %p37_p2  ;;  %s726_s6 = sshll.u32 %s1157_s5, 3 }
  0x30   : > { %s1164_s29 = scalar_lea.hbm %s1324_s0, %s727_s26  ;;  %s181_s28 = scalar_lea.vmem [#allocation2], %s726_s6 }
  0x31   : > { %s1338_s30 = scalar_select %p1152_p12, 1, 0 }
  0x32   : > { %s188_s8 = sshll.u32 %s181_s28, 4  ;;  %p1166_p11 = pnand %p805_p6, %p39_p8  ;;  %s1170_s8 = int_to_ptr.vmem [resolvable:$true] %s188_s8 }
  0x33   : > { %s195_s10 = sand.u32 1, %s1020_s18   ;;  %s178_s11 = scalar_lea.sflag [#allocation3], %s1157_s5 }
  0x34   : > { %s886_s12 = scalar_lea.hbm %s1164_s29, 128  ;;  %p888_p0 = pneg %p1166_p11 }
  0x35   : > { %p887_p13 = scmp.ne.s32.totalorder %s1164_s29, %s886_s12  ;;  %s891_s20 = scalar_lea.hbm %s1324_s0, 256 }
  0x36   : > { %p892_p7 = scmp.lt.u32.totalorder %s1164_s29, %s1324_s0  ;;  %p893_p9 = scmp.lt.u32.totalorder %s891_s20, %s886_s12 }
  0x37   : > { %p889_p3 = pnand %p888_p0, %p887_p13  ;;  %p895_p2 = scmp.lt.u32.totalorder %s886_s12, %s1164_s29 }
  0x38   : > { %p894_p1 = por %p893_p9, %p892_p7 }
  0x39   : > { %p890_p5 = pneg %p889_p3 }
  0x3a   : > { %p896_p4 = por %p895_p2, %p894_p1 }
  0x3c   : > { %p897_p6 = pnand %p896_p4, %p890_p5 }
  0x3e   : > { %900 = shalt.err (!%p897_p6)
}
  0x3f   : > { %s901_s25 = scalar_lea.vmem %s1170_s8, 128  ;;  %s1025_s7 = smov [#allocation2]  }
  0x40   : > { %p902_p8 = scmp.ne.s32.totalorder %s1170_s8, %s901_s25  ;;  %s906_s28 = sshll.u32 %s1025_s7, 4  ;;  %s907_s28 = int_to_ptr.vmem [resolvable:$false] %s906_s28 }
  0x41   : > { %s908_s13 = scalar_lea.vmem %s907_s28, 256  ;;  %p909_p3 = scmp.lt.s32.totalorder %s1170_s8, %s907_s28 }
  0x42   : > { %p904_p10 = pnand %p902_p8, %p888_p0  ;;  %p910_p7 = scmp.lt.s32.totalorder %s908_s13, %s901_s25 }
  0x44   : > { %p905_p13 = pneg %p904_p10  ;;  %p911_p9 = por %p910_p7, %p909_p3 }
  0x46   : > { %p912_p1 = pnand %p911_p9, %p905_p13 }
  0x48   : > { %915 = shalt.err (!%p912_p1)
}
  0x49   : > { %796 = dma.hbm_to_vmem [thread:$0]  (!%p1166_p11), %s1164_s29, 128, %s1170_s8, %s178_s11  }
  0x4a   : > { %s728_s12 = sshll.u32 %s1157_s5, 2  ;;  %s729_s14 = sshll.u32 %s1020_s18, 6 }
  0x4b   : > { %s1204_s6 = scalar_lea.hbm %s1325_s1, %s729_s14  ;;  %s199_s25 = scalar_lea.vmem [#allocation5], %s728_s12 }
  0x4c   : > { %s206_s7 = sshll.u32 %s199_s25, 4  ;;  %s196_s28 = scalar_lea.sflag [#allocation6], %s195_s10  ;;  %s207_s7 = int_to_ptr.vmem [resolvable:$true] %s206_s7 }
  0x4d   : > { %s916_s13 = scalar_lea.hbm %s1204_s6, 64  ;;  %s921_s8 = scalar_lea.hbm %s1325_s1, 128 }
  0x4e   : > { %p917_p5 = scmp.ne.s32.totalorder %s1204_s6, %s916_s13  ;;  %p922_p6 = scmp.lt.u32.totalorder %s1204_s6, %s1325_s1 }
  0x4f   : > { %p923_p8 = scmp.lt.u32.totalorder %s921_s8, %s916_s13  ;;  %p925_p13 = scmp.lt.u32.totalorder %s916_s13, %s1204_s6 }
  0x50   : > { %p919_p2 = pnand %p917_p5, %p888_p0 }
  0x51   : > { %p924_p10 = por %p923_p8, %p922_p6 }
  0x52   : > { %p920_p4 = pneg %p919_p2 }
  0x53   : > { %p926_p3 = por %p925_p13, %p924_p10 }
  0x55   : > { %p927_p7 = pnand %p926_p3, %p920_p4 }
  0x57   : > { %930 = shalt.err (!%p927_p7)
}
  0x58   : > { %s931_s10 = scalar_lea.vmem %s207_s7, 64  ;;  %s1026_s12 = smov [#allocation5]  }
  0x59   : > { %p932_p9 = scmp.ne.s32.totalorder %s207_s7, %s931_s10  ;;  %s936_s20 = sshll.u32 %s1026_s12, 4  ;;  %s937_s20 = int_to_ptr.vmem [resolvable:$false] %s936_s20 }
  0x5a   : > { %s938_s26 = scalar_lea.vmem %s937_s20, 128  ;;  %p939_p2 = scmp.lt.s32.totalorder %s207_s7, %s937_s20 }
  0x5b   : > { %p934_p1 = pnand %p932_p9, %p888_p0  ;;  %p940_p12 = scmp.lt.s32.totalorder %s938_s26, %s931_s10 }
  0x5d   : > { %p935_p5 = pneg %p934_p1  ;;  %p941_p6 = por %p940_p12, %p939_p2 }
  0x5f   : > { %p942_p8 = pnand %p941_p6, %p935_p5 }
  0x61   : > { %945 = shalt.err (!%p942_p8)
}
  0x62   : > { %799 = dma.hbm_to_vmem [thread:$0]  (!%p1166_p11), %s1204_s6, 64, %s207_s7, %s196_s28  }
  0x63   : > { %p1340_p4 = scmp.ne.s32.totalorder %s1335_s23, 0 }
  0x64   : > { %s1230_s25 = sand.u32 (!%p1340_p4), 1, %s1012_s16   ;;  %p1341_p0 = scmp.ne.s32.totalorder (!%p1340_p4), %s1333_s21, 0 }
  0x65   : > { %215 = sbr.rel (%p1340_p4) target bundleno = 717 (0x2cd), region = 36  ;;  %s731_s13 = sshll.u32 (!%p1340_p4), %s1230_s25, 3 }
  0x66   : > { %s218_s5 = scalar_lea.sflag (!%p1340_p4), [#allocation3], %s1230_s25  ;;  %s221_s29 = scalar_lea.vmem (!%p1340_p4), [#allocation2], %s731_s13 }
  0x6c   : > { %991 = dma.done.wait (%p1341_p0), %s218_s5, 128  }
  0x6d   : > { %993 = vsyncadd (%p1341_p0), %s218_s5, 4294967168  ;;  %s226_s9 = sand.u32 1, %s1082_s19   ;;  %s732_s23 = sshll.u32 %s1230_s25, 2 }
  0x6e   : > { %s227_s6 = scalar_lea.sflag [#allocation6], %s226_s9  ;;  %s230_s7 = scalar_lea.vmem [#allocation5], %s732_s23 }
  0x6f   : > { %995 = dma.done.wait (%p1341_p0), %s227_s6, 64  }
  0x70   : > { %997 = vsyncadd (%p1341_p0), %s227_s6, 4294967232  ;;  %p1342_p12 = scmp.eq.s32.totalorder %s1082_s19, 0 }
  0x72   : > { %999 = dma.done.wait (%p1342_p12), [#allocation6], 128   ;;  %p1343_p11 = pmov %p1342_p12 }
  0x73   : > { %v1027_v0 = vmov 0.0   ;;  %vm1028_vm0 = vmmov 0   ;;  %v852_v1 = vld [vmem:[#allocation7] sm:$0xff]   ;;  %v853_v2 = vld [vmem:[%s1327_s3] sm:$0xff]   ;;  %v266_v3 = vld [vmem:[%s230_s7] sm:$0xf]  ;;  %v504_v31 = vlaneseq }
  0x74   : > { %1001 = vsyncadd (%p1343_p11), [#allocation6], 4294967168  ;;  %755 = vmatprep.subr.bf16.mxu0 %v1027_v0  ;;  %761 = vmatprep.subr.bf16.mxu1 %v1027_v0  ;;  %vm292_vm1 = vcmask 130048   ;;  %v265_v4 = vld [vmem:[%s221_s29] sm:$0xff]  ;;  %vm271_vm2 = vcmask 64512   ;;  %vm387_vm3 = vcmask 1043456  }
  0x75   : > { %757 = vmatprep.mubr.msk.bf16.mxu0 %vm1028_vm0, %v1027_v0  ;;  %763 = vmatprep.mubr.msk.bf16.mxu1 %vm1028_vm0, %v1027_v0  ;;  %v382_v5 = vpack.c.bf16 %v265_v4, %v265_v4  ;;  %v272_v6 = vsel %vm271_vm2, %v265_v4, 0.0  ;;  %v1029_v29 = vmov 1983009808   ;;  %v1030_v34 = vmov 1934713408   ;;  %s1031_s8 = smov 32  }
  0x76   : > { %756 = vmatpush3.bf16.msra.mxu0 %v852_v1  ;;  %762 = vmatpush3.bf16.msra.mxu1 %v853_v2  ;;  %v276_v7 = vrot.slane %v272_v6, 4  ;;  %v502_v30 = vunpack.c.l.s4 %v1029_v29  ;;  %v517_v35 = vunpack.c.l.s4 %v1030_v34  ;;  %v505_v40 = vshrl.u32 %v504_v31, 7  ;;  %s1032_s11 = smov 96   ;;  %s1033_s14 = smov 64  }
  0x77   : > { %767 = vmatprep.subr.bf16.mxu0 %v1027_v0  ;;  %773 = vmatprep.subr.bf16.mxu1 %v1027_v0  ;;  %vm573_vm4 = vcmask 261120   ;;  %vm575_vm5 = vcmask 523264   ;;  %s734_s10 = sshll.u32 %s1230_s25, 1  ;;  %vm577_vm6 = vcmask 785408   ;;  %s746_s12 = sshll.u32 %s1082_s19, 5  ;;  %vm602_vm7 = vcmp.lt.s32.totalorder %v504_v31, 256 }
  0x78   : > { %434 = vxpose.xlu0.c.b16.start.end [1/1] (short) (narrow) %v382_v5, 16  ;;  %v277_v8 = vadd.f32 %v276_v7, %v272_v6  ;;  %v503_v39 = vunpack.c.0.s8 %v502_v30  ;;  %v518_v49 = vunpack.c.0.s8 %v517_v35  ;;  %v1034_v7 = vmov 1966171168   ;;  %s263_s20 = scalar_lea.vmem [#allocation8], %s734_s10  ;;  %s1280_s29 = scalar_lea.hbm %s1328_s4, %s746_s12 }
  0x79   : > { %758 = vmatmul.mubr.msk.bf16.vlgmr.msra.gmra.mrb[0].mxu0 %vm292_vm1, %v266_v3  ;;  %764 = vmatmul.mubr.msk.bf16.vlgmr.msra.gmra.mrb[0].mxu1 %vm292_vm1, %v266_v3  ;;  %s620_s26 = sshll.u32 %s263_s20, 4  ;;  %s606_s9 = scalar_lea.sflag [#allocation4], %s1230_s25  ;;  %s1282_s26 = int_to_ptr.vmem [resolvable:$true] %s620_s26 }
  0x7a   : > { %769 = vmatprep.mubr.msk.bf16.mxu0 %vm1028_vm0, %v1027_v0  ;;  %775 = vmatprep.mubr.msk.bf16.mxu1 %vm1028_vm0, %v1027_v0  ;;  %v278_v9 = vrot.slane %v277_v8, 2  ;;  %v506_v50 = vsub.s32 %v503_v39, %v505_v40  ;;  %v521_v53 = vsub.s32 %v518_v49, %v505_v40  ;;  %s946_s23 = scalar_lea.vmem %s1282_s26, 32  ;;  %p1344_p13 = scmp.ne.s32.totalorder %s1338_s30, 0 }
  0x7b   : > { %p947_p10 = scmp.ne.s32.totalorder %s1282_s26, %s946_s23  ;;  %s1035_s19 = smov [#allocation8]  }
  0x7c   : > { %v279_v10 = vadd.f32 %v278_v9, %v277_v8  ;;  %v586_v8 = vunpack.c.l.s4 %v1034_v7  ;;  %s950_s6 = sshll.u32 %s1035_s19, 4  ;;  %s951_s6 = int_to_ptr.vmem [resolvable:$false] %s950_s6 }
  0x7d   : > { %p948_p3 = pnand %p947_p10, %p1344_p13  ;;  %s952_s7 = scalar_lea.vmem %s951_s6, 64 }
  0x7e   : > { %v280_v11 = vrot.slane %v279_v10, 1  ;;  %p953_p9 = scmp.lt.s32.totalorder %s1282_s26, %s951_s6  ;;  %p954_p1 = scmp.lt.s32.totalorder %s952_s7, %s946_s23 }
  0x7f   : > { %p949_p7 = pneg %p948_p3 }
  0x80   : > { %v281_v12 = vadd.f32 %v280_v11, %v279_v10  ;;  %v587_v10 = vunpack.c.0.s8 %v586_v8  ;;  %p955_p5 = por %p954_p1, %p953_p9 }
  0x82   : > { %854 = vrcp.f32 %v281_v12  ;;  %p956_p2 = pnand %p955_p5, %p949_p7 }
  0x85   : > { %273 = vadd.xlane.f32.xlu0 %v272_v6 }
  0x8c   : > { %v855_v13 = vpop.eup %854 }
  0x8d   : > { %284 = vbcast.lane.b32.xlu1 %v855_v13, 256 }
  0xde   : > { %v442_v26 = vpop.trf.xlu0 }
  0xff   : > { %v285_v32 = vpop.permute.xlu1 %284 }
 0x112   : > { %v274_v27 = vpop.xlane.xlu0 %273 }
 0x113   : > { %856 = vrcp.f32 %v274_v27 }
 0x11d   : > { %v857_v28 = vpop.eup %856 }
 0x14c   : > { %v330_v14 = vpop.f32.mrb[0].mxu0  ;;  %v376_v16 = vpop.f32.mrb[0].mxu1 }
 0x14d   : > { %v383_v15 = vpack.c.bf16 %v330_v14, %v330_v14  ;;  %v759_v17 = vpop.f32.mrb[1].mxu0  ;;  %v433_v18 = vpack.c.bf16 %v376_v16, %v376_v16  ;;  %v765_v19 = vpop.f32.mrb[1].mxu1 }
 0x14e   : > { %v333_v20 = vpop.f32.mrb[2].mxu0  ;;  %v379_v22 = vpop.f32.mrb[2].mxu1 }
 0x14f   : > { %v389_v21 = vsel %vm387_vm3, %v383_v15, 0  ;;  %v760_v23 = vpop.f32.mrb[3].mxu0  ;;  %v454_v24 = vsel %vm387_vm3, %v433_v18, 0  ;;  %v766_v25 = vpop.f32.mrb[3].mxu1 }
 0x150   : > { %768 = vmatpush3.bf16.msra.mxu0 %v389_v21  ;;  %774 = vmatpush3.bf16.msra.mxu1 %v454_v24 }
 0x153   : > { %770 = vmatmul.mubr.msk.bf16.vlgmr.msra.gmra.mrb[4].mxu0 %vm271_vm2, %v382_v5  ;;  %776 = vmatmul.mubr.msk.bf16.vlgmr.msra.gmra.mrb[4].mxu1 %vm271_vm2, %v442_v26 }
 0x226   : > { %v425_v33 = vpop.f32.mrb[4].mxu0  ;;  %v490_v37 = vpop.f32.mrb[4].mxu1 }
 0x227   : > { %v431_v36 = vmul.f32 %v857_v28, %v425_v33  ;;  %v771_v38 = vpop.f32.mrb[5].mxu0  ;;  %v496_v41 = vmul.f32 %v490_v37, %v285_v32  ;;  %v777_v42 = vpop.f32.mrb[5].mxu1 }
 0x228   : > { %v428_v43 = vpop.f32.mrb[6].mxu0  ;;  %v493_v45 = vpop.f32.mrb[6].mxu1 }
 0x229   : > { %v432_v44 = vmax.f32 %v431_v36, 0.0  ;;  %v772_v46 = vpop.f32.mrb[7].mxu0  ;;  %v497_v47 = vmax.f32 %v496_v41, 0.0  ;;  %v778_v48 = vpop.f32.mrb[7].mxu1 }
 0x22b   : > { %v498_v51 = vadd.f32 %v497_v47, %v432_v44 }
 0x22d   : > { %v499_v52 = vmul.f32 0.5, %v498_v51 }
 0x22f   : > { %v500_v54 = vcombine.high %v499_v52, %v1027_v0  ;;  %v507_v55 = vrot.slane %v499_v52, %v506_v50 }
 0x231   : > { %v522_v56 = vrot.slane %v507_v55, %v521_v53  ;;  %v515_v57 = vcombine.high %v507_v55, %v1027_v0  ;;  %v514_v58 = vrot.slane %v500_v54, %v506_v50 }
 0x233   : > { %v545_v59 = vcombine.high %v522_v56, %v1027_v0  ;;  %v529_v60 = vrot.slane %v515_v57, %v521_v53  ;;  %v537_v62 = vrot.slane %v514_v58, %v521_v53  ;;  %v530_v1 = vcombine.high %v514_v58, %v1027_v0 }
 0x235   : > { %550 = vrot.lane.b32.xlu1 %v545_v59, %s1031_s8  ;;  %v546_v61 = vcombine.high %v529_v60, %v1027_v0  ;;  %v547_v63 = vcombine.high %v537_v62, %v1027_v0  ;;  %v544_v2 = vrot.slane %v530_v1, %v521_v53 }
 0x237   : > { %558 = vrot.lane.b32.xlu0 %v546_v61, %s1032_s11  ;;  %v548_v3 = vcombine.high %v544_v2, %v1027_v0  ;;  %v590_v0 = vsub.s32 %v587_v10, %v505_v40 }
 0x239   : > { %554 = vrot.lane.b32.xlu1 %v529_v60, %s1033_s14 }
 0x23d   : > { %562 = vrot.lane.b32.xlu1 %v547_v63, %s1031_s8 }
 0x241   : > { %566 = vrot.lane.b32.xlu1 %v544_v2, %s1033_s14 }
 0x245   : > { %570 = vrot.lane.b32.xlu1 %v548_v3, %s1032_s11 }
 0x2a7   : > { %v551_v4 = vpop.permute.xlu1 %550 }
 0x2a8   : > { %v574_v11 = vsel %vm573_vm4, %v522_v56, %v551_v4 }
 0x2a9   : > { %v559_v14 = vpop.permute.xlu0 %558 }
 0x2ab   : > { %v555_v5 = vpop.permute.xlu1 %554 }
 0x2ac   : > { %v576_v12 = vsel %vm575_vm5, %v574_v11, %v555_v5 }
 0x2ad   : > { %v578_v17 = vsel %vm577_vm6, %v576_v12, %v559_v14 }
 0x2af   : > { %v563_v6 = vpop.permute.xlu1 %562 }
 0x2b0   : > { %v579_v13 = vsel %vm573_vm4, %v537_v62, %v563_v6 }
 0x2b3   : > { %v567_v9 = vpop.permute.xlu1 %566 }
 0x2b4   : > { %v580_v15 = vsel %vm575_vm5, %v579_v13, %v567_v9 }
 0x2b7   : > { %v571_v16 = vpop.permute.xlu1 %570 }
 0x2b8   : > { %v581_v18 = vsel %vm577_vm6, %v580_v15, %v571_v16 }
 0x2b9   : > { %v584_v19 = vcombine.low %v578_v17, %v581_v18 }
 0x2bb   : > { %v591_v20 = vrot.slane %v584_v19, %v590_v0 }
 0x2bd   : > { %v598_v21 = vrot.slane %v591_v20, %v590_v0 }
 0x2bf   : > { %604 = vst.msk [vmem:[%s263_s20] sm:$0x3] %vm602_vm7, %v598_v21 }
 0x2c0   : > { %959 = shalt.err (!%p956_p2)
}
 0x2c1   : > { %s960_s25 = scalar_lea.hbm %s1280_s29, 32  ;;  %s964_s8 = scalar_lea.hbm %s1328_s4, 64 }
 0x2c2   : > { %p961_p6 = scmp.ne.s32.totalorder %s1280_s29, %s960_s25  ;;  %p965_p0 = scmp.lt.u32.totalorder %s1280_s29, %s1328_s4 }
 0x2c3   : > { %p966_p12 = scmp.lt.u32.totalorder %s964_s8, %s960_s25  ;;  %p968_p10 = scmp.lt.u32.totalorder %s960_s25, %s1280_s29 }
 0x2c4   : > { %p962_p8 = pnand %p961_p6, %p1344_p13 }
 0x2c5   : > { %p967_p11 = por %p966_p12, %p965_p0 }
 0x2c6   : > { %p963_p4 = pneg %p962_p8 }
 0x2c7   : > { %p969_p3 = por %p968_p10, %p967_p11 }
 0x2c9   : > { %p970_p7 = pnand %p969_p3, %p963_p4 }
 0x2cb   : > { %973 = shalt.err (!%p970_p7)
}
 0x2cc   : > { %787 = dma.vmem_to_hbm [thread:$0]  (%p1344_p13), %s1282_s26, 32, %s1280_s29, %s606_s9  }
 0x2cd PF: > { %s632_s10 = sand.u32 1, %s1008_s15   ;;  %p1345_p9 = scmp.ne.s32.totalorder %s1334_s22, 0 }
 0x2ce   : > { %p1346_p1 = scmp.ge.s32.totalorder %s1020_s18, 2  ;;  %s633_s12 = scalar_lea.sflag [#allocation4], %s632_s10 }
 0x2d0   : > { %p801_p5 = pnand %p1346_p1, %p1345_p9 }
 0x2d2   : > { %1003 = dma.done.wait (!%p801_p5), %s633_s12, 32  }
 0x2d3   : > { %1005 = vsyncadd (!%p801_p5), %s633_s12, 4294967264  ;;  %p20_p2 = scmp.ge.s32.totalorder %s1117_s27, 4   ;;  %s1347_s15 = smov %s1012_s16 }
 0x2d4   : > { %s1348_s16 = smov %s1016_s17  ;;  %s1349_s17 = smov %s1148_s24 }
 0x2d5   : > { %s1350_s18 = smov %s1117_s27  ;;  %22 = sbr.rel (!%p20_p2) target bundleno = 7 (0x7), region = 98 }
 0x2dc   :  { %638 = vsyncpa [#allocation3], 1 }
 0x2dd   :  { %640 = vsyncpa [#allocation3 + $0x1], 1 }
 0x2de   :  { %641 = vsyncpa [#allocation6], 1 }
 0x2df   :  { %643 = vsyncpa [#allocation6 + $0x1], 1 }
 0x2e0   :  { %644 = vsyncpa [#allocation4], 1 }
 0x2e1   :  { %646 = vsyncpa [#allocation4 + $0x1], 1 }

</bundles_post_ra>
